<compile_context>
chip_gen: v6e
topology: v6e:2x2x1
jax: 0.10.0
libtpu: 0.0.40
codegen_flags: <defaults>
</compile_context>

<pallas_src>
import jax
import jax.numpy as jnp
from jax.experimental import pallas as pl
from jax.experimental.pallas import tpu as pltpu

EPS = 1e-5   # nn.BatchNorm1d default eps
LANE = 128


# ----------------------------------------------------------------------------
# Kernel: 5 dense MXU matmuls (no structural zeros) + elementwise tail.
# ----------------------------------------------------------------------------
def residual_gate_text_kernel(
    act_ref, adv_ref,            # (TP, WD)  bf16   raw act / adv word embeddings
    wa_ref, ba_ref,              # (WD, Dp)  bf16 , (1, Dp)     f32   word_proj['act'] * weight_gate[0]
    a1_ref, a2_ref, bh_ref,      # (WD, 2DIp) bf16 x2, (1, 2DIp) f32  fused word_proj+BN+layer1 (both composers)
    w2g_ref, b2g_ref,            # (DIp, Dp) bf16 , (1, Dp)     f32   gated composer layer-2
    w2r_ref, b2r_ref,            # (DIp, Dp) bf16 , (1, Dp)     f32   residual composer layer-2 (* weight_gate[1])
    out_ref,                     # (TP, Dp)  f32   lane-dense output tile
):
    f32 = jnp.float32
    bf16 = jnp.bfloat16
    dip = w2g_ref.shape[0]       # DIp, a multiple of 128

    act = act_ref[...]
    adv = adv_ref[...]

    # modal_main = word_proj['act'](act_emb) * weight_gate[0]   (gate scale pre-folded)
    pa = jnp.dot(act, wa_ref[...], preferred_element_type=f32) + ba_ref[...]

    # fused: word_proj ('sum' composition) + BatchNorm1d(eval) + first Linear of both composers
    h = (jnp.dot(act, a1_ref[...], preferred_element_type=f32)
         + jnp.dot(adv, a2_ref[...], preferred_element_type=f32)
         + bh_ref[...])
    h = jnp.maximum(h, 0.2 * h)          # Dropout(eval)=identity ; LeakyReLU(0.2)
    hb = h.astype(bf16)

    # second Linear of each composer; slices are 128-aligned views (no copy)
    f1 = jnp.dot(hb[:, :dip], w2g_ref[...], preferred_element_type=f32) + b2g_ref[...]
    f2 = jnp.dot(hb[:, dip:], w2r_ref[...], preferred_element_type=f32) + b2r_ref[...]

    # feat_main = sigmoid(f1) * modal_main * wg[0] + f2 * wg[1]   (wg folded into weights)
    out_ref[...] = jax.nn.sigmoid(f1) * pa + f2


# ----------------------------------------------------------------------------
# Wrapper-side parameter fusion + lane padding (one-time, exact in eval mode).
# ----------------------------------------------------------------------------
def _round_up(x, m):
    return ((x + m - 1) // m) * m


def fuse_params(params, eps=EPS, lane=LANE):
    wp_act, wp_adv, wp_comp = params["wp_act"], params["wp_adv"], params["wp_comp"]
    bp_act, bp_adv, bp_comp = params["bp_act"], params["bp_adv"], params["bp_comp"]
    WD, D = wp_act.shape
    DI = 3 * D                          # dim_inner = dim_in + residual_dim
    Dp = _round_up(D, lane)
    DIp = _round_up(DI, lane)

    def fold_bn(bn, w1, b1):
        gamma, beta, mean, var = bn[0], bn[1], bn[2], bn[3]
        s = gamma * jax.lax.rsqrt(var + eps)
        t = beta - mean * s
        return w1 * s[:, None], b1 + t[None, :] @ w1

    w1g, b1g = fold_bn(params["bn_g"], params["w1_g"], params["b1_g"])
    w1r, b1r = fold_bn(params["bn_r"], params["w1_r"], params["b1_r"])

    def fuse_layer1(w1f, b1f):
        # x_cat @ w1f + b1f  ==  act @ A1 + adv @ A2 + Bh,
        # with x_cat = [act@Wa+ba | adv@Wd+bd | (act+adv)@Wc+bc]  ('sum' composition)
        A1 = wp_act @ w1f[0:D] + wp_comp @ w1f[2 * D:3 * D]            # (WD, DI)
        A2 = wp_adv @ w1f[D:2 * D] + wp_comp @ w1f[2 * D:3 * D]        # (WD, DI)
        Bh = (bp_act @ w1f[0:D] + bp_adv @ w1f[D:2 * D]
              + bp_comp @ w1f[2 * D:3 * D] + b1f)                      # (1, DI)
        return A1, A2, Bh

    A1g, A2g, Bhg = fuse_layer1(w1g, b1g)
    A1r, A2r, Bhr = fuse_layer1(w1r, b1r)

    def padc(x, n):                     # zero-pad columns (lane axis)
        return jnp.pad(x, ((0, 0), (0, n - x.shape[1])))

    def padrc(x, r, c):                 # zero-pad rows and columns
        return jnp.pad(x, ((0, r - x.shape[0]), (0, c - x.shape[1])))

    A1 = jnp.concatenate([padc(A1g, DIp), padc(A1r, DIp)], axis=1)     # (WD, 2*DIp)
    A2 = jnp.concatenate([padc(A2g, DIp), padc(A2r, DIp)], axis=1)
    Bh = jnp.concatenate([padc(Bhg, DIp), padc(Bhr, DIp)], axis=1)     # (1, 2*DIp)

    wg = params["weight_gate"]
    Wa = padc(wp_act * wg[0], Dp)       # fold weight_gate[0] into the gate branch projection
    ba = padc(bp_act * wg[0], Dp)

    W2g = padrc(params["w2_g"], DIp, Dp)
    b2g = padc(params["b2_g"], Dp)
    W2r = padrc(params["w2_r"] * wg[1], DIp, Dp)    # fold weight_gate[1]
    b2r = padc(params["b2_r"] * wg[1], Dp)

    bf16, f32 = jnp.bfloat16, jnp.float32
    return dict(
        Wa=Wa.astype(bf16), ba=ba.astype(f32),
        A1=A1.astype(bf16), A2=A2.astype(bf16), Bh=Bh.astype(f32),
        W2g=W2g.astype(bf16), b2g=b2g.astype(f32),
        W2r=W2r.astype(bf16), b2r=b2r.astype(f32),
        D=D, Dp=Dp, DIp=DIp, WD=WD,
    )


# ----------------------------------------------------------------------------
# pallas_call wrapper: row-tiled over the (padded) pair axis, weights replicated.
# ----------------------------------------------------------------------------
def text_projector_pallas(act_emb, adv_emb, fused, *, tile_p=None):
    P, WD = act_emb.shape
    D, Dp, DIp = fused["D"], fused["Dp"], fused["DIp"]

    # Tile choice: single (16-rounded) tile for tiny P; 128-row tiles for medium P so the
    # "parallel" grid axis has >=2 steps (v7x megacore); 256-row tiles for large P (v6e/v7x MXU).
    if tile_p is None:
        if P <= 128:
            tile_p = _round_up(max(P, 16), 16)
        elif P <= 512:
            tile_p = 128
        else:
            tile_p = 256
    tile_p = _round_up(tile_p, 16)
    P_pad = _round_up(P, tile_p)
    grid = (P_pad // tile_p,)

    def pad_rows(x):
        x = x.astype(jnp.bfloat16)
        if P_pad != P:
            x = jnp.pad(x, ((0, P_pad - P), (0, 0)))
        return x

    act = pad_rows(act_emb)
    adv = pad_rows(adv_emb)

    def rep(shape):  # replicated (constant-index) parameter block
        return pl.BlockSpec(shape, lambda i: (0, 0))

    in_specs = [
        pl.BlockSpec((tile_p, WD), lambda i: (i, 0)),          # act row tile
        pl.BlockSpec((tile_p, WD), lambda i: (i, 0)),          # adv row tile
        rep((WD, Dp)), rep((1, Dp)),                           # gate-branch projection (wg[0] folded)
        rep((WD, 2 * DIp)), rep((WD, 2 * DIp)), rep((1, 2 * DIp)),   # fused layer-1 (both composers)
        rep((DIp, Dp)), rep((1, Dp)),                          # gated composer layer-2
        rep((DIp, Dp)), rep((1, Dp)),                          # residual composer layer-2 (wg[1] folded)
    ]
    out_spec = pl.BlockSpec((tile_p, Dp), lambda i: (i, 0))    # lane-dense output

    flops = 2 * P_pad * (WD * Dp + 2 * WD * 2 * DIp + 2 * DIp * Dp)
    bytes_accessed = (
        2 * P_pad * WD * 2
        + (fused["Wa"].size + fused["A1"].size + fused["A2"].size
           + fused["W2g"].size + fused["W2r"].size) * 2
        + (fused["ba"].size + fused["Bh"].size + fused["b2g"].size + fused["b2r"].size) * 4
        + P_pad * Dp * 4
    )
    cost = pl.CostEstimate(flops=flops, transcendentals=P_pad * Dp,
                           bytes_accessed=bytes_accessed)

    out = pl.pallas_call(
        residual_gate_text_kernel,
        out_shape=jax.ShapeDtypeStruct((P_pad, Dp), jnp.float32),
        grid_spec=pltpu.PrefetchScalarGridSpec(
            num_scalar_prefetch=0,
            grid=grid,
            in_specs=in_specs,
            out_specs=out_spec,
        ),
        compiler_params=pltpu.CompilerParams(
            dimension_semantics=("parallel",),
            vmem_limit_bytes=32 * 1024 * 1024),
        cost_estimate=cost,
    )(act, adv,
      fused["Wa"], fused["ba"],
      fused["A1"], fused["A2"], fused["Bh"],
      fused["W2g"], fused["b2g"], fused["W2r"], fused["b2r"])

    return out[:P, :D]


# ----------------------------------------------------------------------------
# Full forward (embedding lookups + kernel + pair-index gathers), mirroring PyTorch.
# ----------------------------------------------------------------------------
def residual_gate_text_forward(params, fused, dset, x):
    # x layout mirrors the PyTorch forward: x[1]=adverbs, x[2]=actions, x[3]=pairs,
    # x[5]=neg_adverbs, x[6]=neg_actions  (all int index vectors of batch size B)
    adverbs, actions, pairs = x[1], x[2], x[3]
    neg_adverbs, neg_actions = x[5], x[6]

    act_emb = params["action_emb"][dset["val_actions"]]   # (P, WD)
    adv_emb = params["adverb_emb"][dset["val_adverbs"]]   # (P, WD)

    output_embeddings = text_projector_pallas(act_emb, adv_emb, fused)  # (P, D)

    positive = output_embeddings[pairs]
    # NOTE: pairidx2idx holds -1 for invalid (adverb, action) combos; like the PyTorch code,
    # -1 wraps to the last row (same semantics as torch LongTensor indexing).
    negative_act = output_embeddings[dset["pairidx2idx"][adverbs, neg_actions]]
    negative_adv = output_embeddings[dset["pairidx2idx"][neg_adverbs, actions]]
    return output_embeddings, positive, negative_act, negative_adv


# ----------------------------------------------------------------------------
# Pure-JAX f32 reference (unfused math) for validation.
# ----------------------------------------------------------------------------
def reference_projector(params, act_emb, adv_emb):
    pa = act_emb @ params["wp_act"] + params["bp_act"]
    pd = adv_emb @ params["wp_adv"] + params["bp_adv"]
    pc = (act_emb + adv_emb) @ params["wp_comp"] + params["bp_comp"]
    x_cat = jnp.concatenate([pa, pd, pc], axis=-1)

    def composer(bn, w1, b1, w2, b2):
        gamma, beta, mean, var = bn[0], bn[1], bn[2], bn[3]
        xn = (x_cat - mean) * jax.lax.rsqrt(var + EPS) * gamma + beta
        h = xn @ w1 + b1
        h = jnp.where(h >= 0, h, 0.2 * h)
        return h @ w2 + b2

    f1 = composer(params["bn_g"], params["w1_g"], params["b1_g"],
                  params["w2_g"], params["b2_g"])
    f2 = composer(params["bn_r"], params["w1_r"], params["b1_r"],
                  params["w2_r"], params["b2_r"])
    wg = params["weight_gate"]
    return jax.nn.sigmoid(f1) * pa * wg[0] + f2 * wg[1]


if __name__ == "__main__":
    # small synthetic "dset": 4 adverbs x 4 actions, all 16 combos are valid pairs
    num_actions, num_adverbs = 4, 4
    WD, D = 48, 32          # word_embedding_dim != out_dim -> word_proj are Linear
    DI = 3 * D              # dim_inner = dim_in + residual_dim = out_dim * num_tokens
    pairs_list = [(a, b) for a in range(num_adverbs) for b in range(num_actions)]
    P = len(pairs_list)     # 16

    val_adverbs = jnp.array([p[0] for p in pairs_list], dtype=jnp.int32)
    val_actions = jnp.array([p[1] for p in pairs_list], dtype=jnp.int32)
    pairidx2idx = -jnp.ones((num_adverbs, num_actions), dtype=jnp.int32)
    pairidx2idx = pairidx2idx.at[val_adverbs, val_actions].set(jnp.arange(P, dtype=jnp.int32))
    dset = dict(val_adverbs=val_adverbs, val_actions=val_actions, pairidx2idx=pairidx2idx)

    key = jax.random.PRNGKey(0)
    ks = jax.random.split(key, 32)

    def nrm(k, shape, scale=0.1):
        return scale * jax.random.normal(k, shape, dtype=jnp.float32)

    def bn_pack(kg, kb, km, kv, dim):
        gamma = 1.0 + nrm(kg, (dim,), 0.05)
        beta = nrm(kb, (dim,), 0.05)
        mean = nrm(km, (dim,), 0.1)
        var = 1.0 + 0.1 * jax.random.uniform(kv, (dim,), dtype=jnp.float32)
        return jnp.stack([gamma, beta, mean, var], axis=0)     # (4, dim)

    params = dict(
        action_emb=nrm(ks[0], (num_actions, WD), 1.0),
        adverb_emb=nrm(ks[1], (num_adverbs, WD), 1.0),
        wp_act=nrm(ks[2], (WD, D)), bp_act=nrm(ks[3], (1, D)),
        wp_adv=nrm(ks[4], (WD, D)), bp_adv=nrm(ks[5], (1, D)),
        wp_comp=nrm(ks[6], (WD, D)), bp_comp=nrm(ks[7], (1, D)),
        bn_g=bn_pack(ks[8], ks[9], ks[10], ks[11], DI),
        w1_g=nrm(ks[12], (DI, DI)), b1_g=nrm(ks[13], (1, DI)),
        w2_g=nrm(ks[14], (DI, D)), b2_g=nrm(ks[15], (1, D)),
        bn_r=bn_pack(ks[16], ks[17], ks[18], ks[19], DI),
        w1_r=nrm(ks[20], (DI, DI)), b1_r=nrm(ks[21], (1, DI)),
        w2_r=nrm(ks[22], (DI, D)), b2_r=nrm(ks[23], (1, D)),
        weight_gate=jnp.array([1.0, 1.0], dtype=jnp.float32),  # init_weight=[1.0, 1.0]
    )

    fused = fuse_params(params)   # one-time wrapper-side weight fusion + lane padding

    # batch of index inputs (as produced by the dataloader in the original code)
    B = 6
    kb = jax.random.split(ks[24], 4)
    adverbs = jax.random.randint(kb[0], (B,), 0, num_adverbs, dtype=jnp.int32)
    actions = jax.random.randint(kb[1], (B,), 0, num_actions, dtype=jnp.int32)
    pair_idx = pairidx2idx[adverbs, actions]
    neg_adverbs = jax.random.randint(kb[2], (B,), 0, num_adverbs, dtype=jnp.int32)
    neg_actions = jax.random.randint(kb[3], (B,), 0, num_actions, dtype=jnp.int32)
    x = [None, adverbs, actions, pair_idx, None, neg_adverbs, neg_actions]

    out = residual_gate_text_forward(params, fused, dset, x)
    jax.block_until_ready(out)

    # validate the fused bf16 kernel against the pure-JAX f32 reference (loose tol for bf16)
    act_emb = params["action_emb"][dset["val_actions"]]
    adv_emb = params["adverb_emb"][dset["val_adverbs"]]
    ref = reference_projector(params, act_emb, adv_emb)
    err = float(jnp.max(jnp.abs(out[0] - ref)))
    assert out[0].shape == ref.shape, (out[0].shape, ref.shape)
    assert err < 1e-1, f"kernel deviates from reference: max abs err = {err}"

    print("KERNEL_OK")
</pallas_src>

<mosaic_0001>
module attributes {stable_mosaic.version = 11 : i64} {
  func.func @residual_gate_text_kernel(%arg0: i32, %arg1: memref<16x48xbf16, #tpu.memory_space<vmem>>, %arg2: memref<16x48xbf16, #tpu.memory_space<vmem>>, %arg3: memref<48x128xbf16, #tpu.memory_space<vmem>>, %arg4: memref<1x128xf32, #tpu.memory_space<vmem>>, %arg5: memref<48x256xbf16, #tpu.memory_space<vmem>>, %arg6: memref<48x256xbf16, #tpu.memory_space<vmem>>, %arg7: memref<1x256xf32, #tpu.memory_space<vmem>>, %arg8: memref<128x128xbf16, #tpu.memory_space<vmem>>, %arg9: memref<1x128xf32, #tpu.memory_space<vmem>>, %arg10: memref<128x128xbf16, #tpu.memory_space<vmem>>, %arg11: memref<1x128xf32, #tpu.memory_space<vmem>>, %arg12: memref<16x128xf32, #tpu.memory_space<vmem>>) attributes {dimension_semantics = [#tpu.dimension_semantics<parallel>], iteration_bounds = array<i64: 1>, scalar_prefetch = 0 : i64, scratch_operands = 0 : i64, tpu.core_type = #tpu.core_type<tc>, window_params = [{transform_indices = @transform_0, window_bounds = array<i64: 16, 48>}, {transform_indices = @transform_1, window_bounds = array<i64: 16, 48>}, {pipeline_mode = #tpu.pipeline_mode<synchronous>, transform_indices = @transform_2, window_bounds = array<i64: 48, 128>}, {pipeline_mode = #tpu.pipeline_mode<synchronous>, transform_indices = @transform_3, window_bounds = array<i64: 1, 128>}, {pipeline_mode = #tpu.pipeline_mode<synchronous>, transform_indices = @transform_4, window_bounds = array<i64: 48, 256>}, {pipeline_mode = #tpu.pipeline_mode<synchronous>, transform_indices = @transform_5, window_bounds = array<i64: 48, 256>}, {pipeline_mode = #tpu.pipeline_mode<synchronous>, transform_indices = @transform_6, window_bounds = array<i64: 1, 256>}, {pipeline_mode = #tpu.pipeline_mode<synchronous>, transform_indices = @transform_7, window_bounds = array<i64: 128, 128>}, {pipeline_mode = #tpu.pipeline_mode<synchronous>, transform_indices = @transform_8, window_bounds = array<i64: 1, 128>}, {pipeline_mode = #tpu.pipeline_mode<synchronous>, transform_indices = @transform_9, window_bounds = array<i64: 128, 128>}, {pipeline_mode = #tpu.pipeline_mode<synchronous>, transform_indices = @transform_10, window_bounds = array<i64: 1, 128>}, {transform_indices = @transform_11, window_bounds = array<i64: 16, 128>}]} {
    %c0 = arith.constant 0 : index
    %c0_0 = arith.constant 0 : index
    %0 = vector.load %arg1[%c0, %c0_0] : memref<16x48xbf16, #tpu.memory_space<vmem>>, vector<16x48xbf16>
    %c0_1 = arith.constant 0 : index
    %c0_2 = arith.constant 0 : index
    %1 = vector.load %arg2[%c0_1, %c0_2] : memref<16x48xbf16, #tpu.memory_space<vmem>>, vector<16x48xbf16>
    %c0_3 = arith.constant 0 : index
    %c0_4 = arith.constant 0 : index
    %2 = vector.load %arg3[%c0_3, %c0_4] : memref<48x128xbf16, #tpu.memory_space<vmem>>, vector<48x128xbf16>
    %cst = arith.constant dense<0.000000e+00> : vector<16x128xf32>
    %3 = tpu.matmul %0, %2, %cst {dimension_numbers = #tpu.dot_dimension_numbers<[1], [0], [0], [1], [0, 0, 1, 1], [], []>} : vector<16x48xbf16>, vector<48x128xbf16>, vector<16x128xf32> -> vector<16x128xf32>
    %c0_5 = arith.constant 0 : index
    %c0_6 = arith.constant 0 : index
    %4 = vector.load %arg4[%c0_5, %c0_6] : memref<1x128xf32, #tpu.memory_space<vmem>>, vector<1x128xf32>
    %5 = vector.broadcast %4 : vector<1x128xf32> to vector<16x128xf32>
    %6 = arith.addf %3, %5 : vector<16x128xf32>
    %c0_7 = arith.constant 0 : index
    %c0_8 = arith.constant 0 : index
    %7 = vector.load %arg5[%c0_7, %c0_8] : memref<48x256xbf16, #tpu.memory_space<vmem>>, vector<48x256xbf16>
    %cst_9 = arith.constant dense<0.000000e+00> : vector<16x256xf32>
    %8 = tpu.matmul %0, %7, %cst_9 {dimension_numbers = #tpu.dot_dimension_numbers<[1], [0], [0], [1], [0, 0, 1, 1], [], []>} : vector<16x48xbf16>, vector<48x256xbf16>, vector<16x256xf32> -> vector<16x256xf32>
    %c0_10 = arith.constant 0 : index
    %c0_11 = arith.constant 0 : index
    %9 = vector.load %arg6[%c0_10, %c0_11] : memref<48x256xbf16, #tpu.memory_space<vmem>>, vector<48x256xbf16>
    %cst_12 = arith.constant dense<0.000000e+00> : vector<16x256xf32>
    %10 = tpu.matmul %1, %9, %cst_12 {dimension_numbers = #tpu.dot_dimension_numbers<[1], [0], [0], [1], [0, 0, 1, 1], [], []>} : vector<16x48xbf16>, vector<48x256xbf16>, vector<16x256xf32> -> vector<16x256xf32>
    %11 = arith.addf %8, %10 : vector<16x256xf32>
    %c0_13 = arith.constant 0 : index
    %c0_14 = arith.constant 0 : index
    %12 = vector.load %arg7[%c0_13, %c0_14] : memref<1x256xf32, #tpu.memory_space<vmem>>, vector<1x256xf32>
    %13 = vector.broadcast %12 : vector<1x256xf32> to vector<16x256xf32>
    %14 = arith.addf %11, %13 : vector<16x256xf32>
    %cst_15 = arith.constant 2.000000e-01 : f32
    %15 = vector.broadcast %cst_15 : f32 to vector<16x256xf32>
    %16 = arith.mulf %15, %14 : vector<16x256xf32>
    %17 = arith.maximumf %14, %16 : vector<16x256xf32>
    %18 = arith.truncf %17 : vector<16x256xf32> to vector<16x256xbf16>
    %19 = vector.extract_strided_slice %18 {offsets = [0, 0], sizes = [16, 128], strides = [1, 1]} : vector<16x256xbf16> to vector<16x128xbf16>
    %c0_16 = arith.constant 0 : index
    %c0_17 = arith.constant 0 : index
    %20 = vector.load %arg8[%c0_16, %c0_17] : memref<128x128xbf16, #tpu.memory_space<vmem>>, vector<128x128xbf16>
    %cst_18 = arith.constant dense<0.000000e+00> : vector<16x128xf32>
    %21 = tpu.matmul %19, %20, %cst_18 {dimension_numbers = #tpu.dot_dimension_numbers<[1], [0], [0], [1], [0, 0, 1, 1], [], []>} : vector<16x128xbf16>, vector<128x128xbf16>, vector<16x128xf32> -> vector<16x128xf32>
    %c0_19 = arith.constant 0 : index
    %c0_20 = arith.constant 0 : index
    %22 = vector.load %arg9[%c0_19, %c0_20] : memref<1x128xf32, #tpu.memory_space<vmem>>, vector<1x128xf32>
    %23 = vector.broadcast %22 : vector<1x128xf32> to vector<16x128xf32>
    %24 = arith.addf %21, %23 : vector<16x128xf32>
    %25 = vector.extract_strided_slice %18 {offsets = [0, 128], sizes = [16, 128], strides = [1, 1]} : vector<16x256xbf16> to vector<16x128xbf16>
    %c0_21 = arith.constant 0 : index
    %c0_22 = arith.constant 0 : index
    %26 = vector.load %arg10[%c0_21, %c0_22] : memref<128x128xbf16, #tpu.memory_space<vmem>>, vector<128x128xbf16>
    %cst_23 = arith.constant dense<0.000000e+00> : vector<16x128xf32>
    %27 = tpu.matmul %25, %26, %cst_23 {dimension_numbers = #tpu.dot_dimension_numbers<[1], [0], [0], [1], [0, 0, 1, 1], [], []>} : vector<16x128xbf16>, vector<128x128xbf16>, vector<16x128xf32> -> vector<16x128xf32>
    %c0_24 = arith.constant 0 : index
    %c0_25 = arith.constant 0 : index
    %28 = vector.load %arg11[%c0_24, %c0_25] : memref<1x128xf32, #tpu.memory_space<vmem>>, vector<1x128xf32>
    %29 = vector.broadcast %28 : vector<1x128xf32> to vector<16x128xf32>
    %30 = arith.addf %27, %29 : vector<16x128xf32>
    %31 = arith.negf %24 : vector<16x128xf32>
    %32 = math.exp %31 : vector<16x128xf32>
    %cst_26 = arith.constant 1.000000e+00 : f32
    %33 = vector.broadcast %cst_26 : f32 to vector<16x128xf32>
    %34 = arith.addf %33, %32 : vector<16x128xf32>
    %35 = arith.divf %33, %34 : vector<16x128xf32>
    %36 = arith.mulf %35, %6 : vector<16x128xf32>
    %37 = arith.addf %36, %30 : vector<16x128xf32>
    %c0_27 = arith.constant 0 : index
    %c0_28 = arith.constant 0 : index
    %38 = vector.load %arg12[%c0_27, %c0_28] : memref<16x128xf32, #tpu.memory_space<vmem>>, vector<16x128xf32>
    tpu.vector_store %arg12[%c0_27, %c0_28], %37 {strides = array<i32>} : memref<16x128xf32, #tpu.memory_space<vmem>>, vector<16x128xf32>,
    return
  }
  func.func @transform_0(%arg0: i32) -> (i32, i32) {
    %c0_i32 = arith.constant 0 : i32
    %c0_i32_0 = arith.constant 0 : i32
    return %arg0, %c0_i32 : i32, i32
  }
  func.func @transform_1(%arg0: i32) -> (i32, i32) {
    %c0_i32 = arith.constant 0 : i32
    %c0_i32_0 = arith.constant 0 : i32
    return %arg0, %c0_i32 : i32, i32
  }
  func.func @transform_2(%arg0: i32) -> (i32, i32) {
    %c0_i32 = arith.constant 0 : i32
    %c0_i32_0 = arith.constant 0 : i32
    %c0_i32_1 = arith.constant 0 : i32
    return %c0_i32, %c0_i32_0 : i32, i32
  }
  func.func @transform_3(%arg0: i32) -> (i32, i32) {
    %c0_i32 = arith.constant 0 : i32
    %c0_i32_0 = arith.constant 0 : i32
    %c0_i32_1 = arith.constant 0 : i32
    return %c0_i32, %c0_i32_0 : i32, i32
  }
  func.func @transform_4(%arg0: i32) -> (i32, i32) {
    %c0_i32 = arith.constant 0 : i32
    %c0_i32_0 = arith.constant 0 : i32
    %c0_i32_1 = arith.constant 0 : i32
    return %c0_i32, %c0_i32_0 : i32, i32
  }
  func.func @transform_5(%arg0: i32) -> (i32, i32) {
    %c0_i32 = arith.constant 0 : i32
    %c0_i32_0 = arith.constant 0 : i32
    %c0_i32_1 = arith.constant 0 : i32
    return %c0_i32, %c0_i32_0 : i32, i32
  }
  func.func @transform_6(%arg0: i32) -> (i32, i32) {
    %c0_i32 = arith.constant 0 : i32
    %c0_i32_0 = arith.constant 0 : i32
    %c0_i32_1 = arith.constant 0 : i32
    return %c0_i32, %c0_i32_0 : i32, i32
  }
  func.func @transform_7(%arg0: i32) -> (i32, i32) {
    %c0_i32 = arith.constant 0 : i32
    %c0_i32_0 = arith.constant 0 : i32
    %c0_i32_1 = arith.constant 0 : i32
    return %c0_i32, %c0_i32_0 : i32, i32
  }
  func.func @transform_8(%arg0: i32) -> (i32, i32) {
    %c0_i32 = arith.constant 0 : i32
    %c0_i32_0 = arith.constant 0 : i32
    %c0_i32_1 = arith.constant 0 : i32
    return %c0_i32, %c0_i32_0 : i32, i32
  }
  func.func @transform_9(%arg0: i32) -> (i32, i32) {
    %c0_i32 = arith.constant 0 : i32
    %c0_i32_0 = arith.constant 0 : i32
    %c0_i32_1 = arith.constant 0 : i32
    return %c0_i32, %c0_i32_0 : i32, i32
  }
  func.func @transform_10(%arg0: i32) -> (i32, i32) {
    %c0_i32 = arith.constant 0 : i32
    %c0_i32_0 = arith.constant 0 : i32
    %c0_i32_1 = arith.constant 0 : i32
    return %c0_i32, %c0_i32_0 : i32, i32
  }
  func.func @transform_11(%arg0: i32) -> (i32, i32) {
    %c0_i32 = arith.constant 0 : i32
    %c0_i32_0 = arith.constant 0 : i32
    return %arg0, %c0_i32 : i32, i32
  }
}

</mosaic_0001>

<bundles_post_ra>
// kernel: tpu_custom_call.1
= control target key start
LH: loop header
LB: loop body
LE: loop exit
PB: predicated region body
PF: predicated region fallthrough
CT: control target
= control target key end

     0   :  { %16 = vsyncpa [#allocation3], 0  ;;  %s1182_s0 = inlined_call_operand.hbm [shape: bf16[16,48], index: 0, kind: input, shape index: {}]   ;;  %s1183_s1 = inlined_call_operand.hbm [shape: bf16[16,48], index: 1, kind: input, shape index: {}]   ;;  %s1184_s2 = inlined_call_operand.hbm [shape: bf16[48,128], index: 2, kind: input, shape index: {}]   ;;  %s1185_s3 = inlined_call_operand.vmem [shape: f32[1,128], index: 3, kind: input, shape index: {}]   ;;  %s1186_s4 = inlined_call_operand.hbm [shape: bf16[48,256], index: 4, kind: input, shape index: {}]   ;;  %s1187_s5 = inlined_call_operand.hbm [shape: bf16[48,256], index: 5, kind: input, shape index: {}]   ;;  %s1188_s6 = inlined_call_operand.vmem [shape: f32[1,256], index: 6, kind: input, shape index: {}]   ;;  %s1189_s7 = inlined_call_operand.hbm [shape: bf16[128,128], index: 7, kind: input, shape index: {}]   ;;  %s1190_s8 = inlined_call_operand.vmem [shape: f32[1,128], index: 8, kind: input, shape index: {}]   ;;  %s1191_s9 = inlined_call_operand.hbm [shape: bf16[128,128], index: 9, kind: input, shape index: {}]   ;;  %s1192_s10 = inlined_call_operand.vmem [shape: f32[1,128], index: 10, kind: input, shape index: {}]   ;;  %s1193_s11 = inlined_call_operand.hbm [shape: f32[16,128], index: 11, kind: output, shape index: {}]  }
   0x1   :  { %17 = vsyncpa [#allocation6], 0 }
   0x2   :  { %18 = vsyncpa [#allocation9], 0 }
   0x3   :  { %19 = vsyncpa [#allocation12], 0 }
   0x4   :  { %20 = vsyncpa [#allocation4], 0  ;;  %s1019_s17 = smov [#allocation5]   ;;  %s1020_s19 = smov [#allocation8]  }
   0x5   :  { %s38_s18 = sshll.u32 %s1019_s17, 4  ;;  %s64_s20 = sshll.u32 %s1020_s19, 4  ;;  %s39_s18 = int_to_ptr.vmem [resolvable:$true] %s38_s18  ;;  %s65_s20 = int_to_ptr.vmem [resolvable:$true] %s64_s20 }
   0x6   :  { %s857_s21 = scalar_lea.vmem %s39_s18, 128  ;;  %p862_p1 = scmp.lt.s32.totalorder %s39_s18, %s39_s18 }
   0x7   :  { %p858_p0 = scmp.ne.s32.totalorder %s39_s18, %s857_s21  ;;  %p863_p2 = scmp.lt.s32.totalorder %s857_s21, %s857_s21 }
   0x9   :  { %p864_p3 = por %p863_p2, %p862_p1 }
   0xb   :  { %p865_p4 = pnand %p864_p3, %p858_p0 }
   0xd   :  { %868 = shalt.err (!%p865_p4)
}
   0xe   :  { %s1021_s22 = smov 64   ;;  %s1022_s23 = smov 4  }
   0xf   :  { %44 = dma.hbm_to_vmem [thread:$0]  %s1183_s1, 128, %s39_s18, [#allocation6], %s1021_s22, %s1021_s22, %s1022_s23  }
  0x10   :  { %s877_s26 = scalar_lea.vmem %s65_s20, 768  ;;  %p882_p6 = scmp.lt.s32.totalorder %s65_s20, %s65_s20 }
  0x11   :  { %p878_p5 = scmp.ne.s32.totalorder %s65_s20, %s877_s26  ;;  %p883_p7 = scmp.lt.s32.totalorder %s877_s26, %s877_s26 }
  0x13   :  { %p884_p8 = por %p883_p7, %p882_p6 }
  0x15   :  { %p885_p9 = pnand %p884_p8, %p878_p5 }
  0x17   :  { %888 = shalt.err (!%p885_p9)
}
  0x18   :  { %s1023_s27 = smov 128   ;;  %s1024_s28 = smov 8  }
  0x19   :  { %70 = dma.hbm_to_vmem [thread:$0]  %s1186_s4, 768, %s65_s20, [#allocation9], %s1023_s27, %s1023_s27, %s1024_s28  }
  0x1a   :  { %s1025_s12 = smov [#allocation11]   ;;  %s1026_s14 = smov [#allocation2]  }
  0x1b   :  { %s90_s13 = sshll.u32 %s1025_s12, 4  ;;  %s26_s1 = sshll.u32 %s1026_s14, 4  ;;  %s91_s13 = int_to_ptr.vmem [resolvable:$true] %s90_s13  ;;  %s27_s1 = int_to_ptr.vmem [resolvable:$true] %s26_s1 }
  0x1c   :  { %s897_s15 = scalar_lea.vmem %s91_s13, 1024  ;;  %p902_p11 = scmp.lt.s32.totalorder %s91_s13, %s91_s13 }
  0x1d   :  { %p898_p10 = scmp.ne.s32.totalorder %s91_s13, %s897_s15  ;;  %p903_p12 = scmp.lt.s32.totalorder %s897_s15, %s897_s15 }
  0x1f   :  { %p904_p13 = por %p903_p12, %p902_p11 }
  0x21   :  { %p905_p0 = pnand %p904_p13, %p898_p10 }
  0x23   :  { %908 = shalt.err (!%p905_p0)
}
  0x24   :  { %96 = dma.hbm_to_vmem [thread:$0]  %s1189_s7, 1024, %s91_s13, [#allocation12], %s1021_s22, %s1021_s22, %s1022_s23  }
  0x25   :  { %s917_s4 = scalar_lea.vmem %s27_s1, 128  ;;  %p922_p2 = scmp.lt.s32.totalorder %s27_s1, %s27_s1 }
  0x26   :  { %p918_p1 = scmp.ne.s32.totalorder %s27_s1, %s917_s4  ;;  %p923_p3 = scmp.lt.s32.totalorder %s917_s4, %s917_s4 }
  0x28   :  { %p924_p4 = por %p923_p3, %p922_p2 }
  0x2a   :  { %p925_p5 = pnand %p924_p4, %p918_p1 }
  0x2c   :  { %928 = shalt.err (!%p925_p5)
}
  0x2d   :  { %32 = dma.hbm_to_vmem [thread:$0]  %s1182_s0, 128, %s27_s1, [#allocation3], %s1021_s22, %s1021_s22, %s1022_s23  }
  0x2e   :  { %s1027_s20 = smov [#allocation7]   ;;  %s1028_s24 = smov [#allocation10]  }
  0x2f   :  { %s50_s21 = sshll.u32 %s1027_s20, 4  ;;  %s76_s25 = sshll.u32 %s1028_s24, 4  ;;  %s51_s21 = int_to_ptr.vmem [resolvable:$true] %s50_s21  ;;  %s77_s25 = int_to_ptr.vmem [resolvable:$true] %s76_s25 }
  0x30   :  { %s937_s7 = scalar_lea.vmem %s51_s21, 384  ;;  %p942_p7 = scmp.lt.s32.totalorder %s51_s21, %s51_s21 }
  0x31   :  { %p938_p6 = scmp.ne.s32.totalorder %s51_s21, %s937_s7  ;;  %p943_p8 = scmp.lt.s32.totalorder %s937_s7, %s937_s7 }
  0x33   :  { %p944_p9 = por %p943_p8, %p942_p7 }
  0x35   :  { %p945_p10 = pnand %p944_p9, %p938_p6 }
  0x37   :  { %948 = shalt.err (!%p945_p10)
}
  0x38   :  { %56 = dma.hbm_to_vmem [thread:$0]  %s1184_s2, 384, %s51_s21, [#allocation6], %s1021_s22, %s1021_s22, %s1022_s23  }
  0x39   :  { %s957_s0 = scalar_lea.vmem %s77_s25, 768  ;;  %p962_p12 = scmp.lt.s32.totalorder %s77_s25, %s77_s25 }
  0x3a   :  { %p958_p11 = scmp.ne.s32.totalorder %s77_s25, %s957_s0  ;;  %p963_p13 = scmp.lt.s32.totalorder %s957_s0, %s957_s0 }
  0x3c   :  { %p964_p0 = por %p963_p13, %p962_p12 }
  0x3e   :  { %p965_p1 = pnand %p964_p0, %p958_p11 }
  0x40   :  { %968 = shalt.err (!%p965_p1)
}
  0x41   :  { %82 = dma.hbm_to_vmem [thread:$0]  %s1187_s5, 768, %s77_s25, [#allocation9], %s1023_s27, %s1023_s27, %s1024_s28  }
  0x42   :  { %s1029_s13 = smov [#allocation13]  }
  0x43   :  { %s104_s14 = sshll.u32 %s1029_s13, 4  ;;  %s105_s14 = int_to_ptr.vmem [resolvable:$true] %s104_s14 }
  0x44   :  { %s977_s1 = scalar_lea.vmem %s105_s14, 1024  ;;  %p982_p3 = scmp.lt.s32.totalorder %s105_s14, %s105_s14 }
  0x45   :  { %p978_p2 = scmp.ne.s32.totalorder %s105_s14, %s977_s1  ;;  %p983_p4 = scmp.lt.s32.totalorder %s977_s1, %s977_s1 }
  0x47   :  { %p984_p5 = por %p983_p4, %p982_p3 }
  0x49   :  { %p985_p6 = pnand %p984_p5, %p978_p2 }
  0x4b   :  { %988 = shalt.err (!%p985_p6)
}
  0x4c   :  { %110 = dma.hbm_to_vmem [thread:$0]  %s1191_s9, 1024, %s105_s14, [#allocation12], %s1021_s22, %s1021_s22, %s1022_s23  }
  0x4d   :  { %1009 = dma.done.wait [#allocation3], 128  }
  0x4e   :  { %1010 = vsyncadd [#allocation3], 4294967168 }
  0x4f   :  { %1011 = dma.done.wait [#allocation6], 512  }
  0x50   :  { %1012 = vsyncadd [#allocation6], 4294966784 }
  0x51   :  { %1013 = dma.done.wait [#allocation9], 1536  }
  0x52   :  { %1014 = vsyncadd [#allocation9], 4294965760 }
  0x53   :  { %1015 = dma.done.wait [#allocation12], 2048  }
  0x54   :  { %1016 = vsyncadd [#allocation12], 4294965248  ;;  %v1030_v0 = vmov 0.0   ;;  %vm1031_vm0 = vmmov 0   ;;  %v1032_v1 = vmov 0   ;;  %v802_v2 = vld [vmem:[#allocation7 + $0x10] sm:$0xff]   ;;  %v388_v35 = vlaneseq }
  0x55   :  { %737 = vmatprep.subr.bf16.mxu0 %v1030_v0  ;;  %743 = vmatprep.mubr.msk.bf16.mxu0 %vm1031_vm0, %v1030_v0  ;;  %v803_v3 = vld [vmem:[#allocation7 + $0x8] sm:$0xff]   ;;  %v808_v6 = vld [vmem:[#allocation10 + $0x14] ss:$8 sps:$4 sm:$0xff]   ;;  %v810_v7 = vld [vmem:[#allocation10 + $0x10] ss:$8 sps:$4 sm:$0xff]   ;;  %vm175_vm1 = vcmask 392192  }
  0x56   :  { %302 = vmatprep.mubr.bf16.mxu1 %v1032_v1  ;;  %738 = vmatpush3.bf16.msra.mxu0 %v802_v2  ;;  %v804_v4 = vld [vmem:[#allocation10 + $0x24] ss:$8 sps:$4 sm:$0xff]   ;;  %v806_v5 = vld [vmem:[#allocation10 + $0x20] ss:$8 sps:$4 sm:$0xff]   ;;  %v807_v8 = vld [vmem:[#allocation7] sm:$0xff]   ;;  %v389_v38 = vshrl.u32 %v388_v35, 7 }
  0x57   :  { %739 = vmatprep.subr.bf16.mxu0 %v1030_v0  ;;  %280 = vmatprep.subr.bf16.mxu1 %v804_v4  ;;  %v811_v9 = vld [vmem:[#allocation2] sm:$0xff]   ;;  %v814_v10 = vld [vmem:[#allocation8 + $0x24] ss:$8 sps:$4 sm:$0xff]   ;;  %v812_v13 = vld [vmem:[#allocation8 + $0x20] ss:$8 sps:$4 sm:$0xff]   ;;  %s1033_s4 = smov [#allocation14]  }
  0x58   :  { %281 = vmatpush1.bf16.msra.mxu1 %v806_v5  ;;  %v815_v11 = vld [vmem:[#allocation10 + $0x4] ss:$8 sps:$4 sm:$0xff]   ;;  %v817_v12 = vld [vmem:[#allocation10] ss:$8 sps:$4 sm:$0xff]   ;;  %v821_v15 = vld [vmem:[#allocation5] sm:$0xff]   ;;  %v390_v42 = vsub.s32 0, %v389_v38 }
  0x59   :  { %282 = vmatprep.subr.bf16.mxu1 %v808_v6  ;;  %v820_v14 = vld [vmem:[#allocation8 + $0x14] ss:$8 sps:$4 sm:$0xff]   ;;  %v818_v17 = vld [vmem:[#allocation8 + $0x10] ss:$8 sps:$4 sm:$0xff]   ;;  %v824_v18 = vld [vmem:[#allocation8 + $0x4] ss:$8 sps:$4 sm:$0xff]  }
  0x5a   :  { %740 = vmatpush3.bf16.msra.mxu0 %v803_v3  ;;  %v825_v16 = vld [vmem:[#allocation11 + $0x38] sm:$0xff]   ;;  %v822_v19 = vld [vmem:[#allocation8] ss:$8 sps:$4 sm:$0xff]   ;;  %v827_v21 = vld [vmem:[#allocation11 + $0x30] sm:$0xff]   ;;  %v394_v44 = vsub.s32 1, %v389_v38  ;;  %s659_s18 = sshll.u32 %s1033_s4, 4  ;;  %s660_s18 = int_to_ptr.vmem [resolvable:$true] %s659_s18 }
  0x5b   :  { %741 = vmatprep.subr.bf16.mxu0 %v1030_v0  ;;  %v826_v20 = vld [vmem:[#allocation13 + $0x38] sm:$0xff]   ;;  %v828_v22 = vld [vmem:[#allocation13 + $0x30] sm:$0xff]   ;;  %v829_v23 = vld [vmem:[#allocation11 + $0x28] sm:$0xff]   ;;  %p994_p8 = scmp.lt.s32.totalorder %s660_s18, %s660_s18 }
  0x5c   :  { %283 = vmatpush1.bf16.msra.mxu1 %v810_v7  ;;  %v830_v24 = vld [vmem:[#allocation13 + $0x28] sm:$0xff]   ;;  %v831_v25 = vld [vmem:[#allocation11 + $0x20] sm:$0xff]   ;;  %v833_v27 = vld [vmem:[#allocation11 + $0x18] sm:$0xff]  }
  0x5d   :  { %284 = vmatprep.subr.bf16.mxu1 %v815_v11  ;;  %v832_v26 = vld [vmem:[#allocation13 + $0x20] sm:$0xff]   ;;  %v834_v28 = vld [vmem:[#allocation13 + $0x18] sm:$0xff]   ;;  %v835_v29 = vld [vmem:[#allocation11 + $0x10] sm:$0xff]  }
  0x5e   :  { %742 = vmatpush3.bf16.msra.mxu0 %v807_v8  ;;  %v836_v30 = vld [vmem:[#allocation13 + $0x10] sm:$0xff]   ;;  %v837_v31 = vld [vmem:[#allocation11 + $0x8] sm:$0xff]   ;;  %v839_v33 = vld [vmem:[#allocation11] sm:$0xff]  }
  0x5f   :  { %353 = vmatprep.subr.bf16.mxu0 %v814_v10  ;;  %v838_v32 = vld [vmem:[#allocation13 + $0x8] sm:$0xff]   ;;  %v840_v34 = vld [vmem:[#allocation13] sm:$0xff]   ;;  %v386_v43 = vld [vmem:[%s1188_s6] sm:$0x3] }
  0x60   :  { %285 = vmatpush1.bf16.msra.mxu1 %v817_v12  ;;  %v391_v46 = vrot.slane %v386_v43, %v390_v42  ;;  %v395_v49 = vrot.slane %v386_v43, %v394_v44  ;;  %v695_v8 = vld [vmem:[%s1190_s8] ss:$0 sm:$0xff] }
  0x61   :  { %744 = vmatmul.mubr.msk.bf16.vlgmr.msra.gmra.mxu0 %vm175_vm1, %v811_v9  ;;  %747 = vmatprep.subr.bf16.mxu1 %v1030_v0 }
  0x62   :  { %354 = vmatpush1.bf16.msra.mxu0 %v812_v13  ;;  %375 = vmatprep.mubr.bf16.mxu0 %v1032_v1 }
  0x63   :  { %355 = vmatprep.subr.bf16.mxu0 %v820_v14  ;;  %687 = vmatmul.mubr.msk.bf16.vlgmr.msra.gmra.mxu1 %vm175_vm1, %v821_v15 }
  0x64   :  { %748 = vmatpush3.bf16.msra.mxu1 %v825_v16  ;;  %763 = vmatprep.mubr.msk.bf16.mxu1 %vm1031_vm0, %v1030_v0 }
  0x65   :  { %749 = vmatprep.subr.bf16.mxu1 %v1030_v0 }
  0x66   :  { %356 = vmatpush1.bf16.msra.mxu0 %v818_v17 }
  0x67   :  { %357 = vmatprep.subr.bf16.mxu0 %v824_v18 }
  0x68   :  { %750 = vmatpush3.bf16.msra.mxu1 %v827_v21 }
  0x69   :  { %751 = vmatprep.subr.bf16.mxu1 %v1030_v0 }
  0x6a   :  { %358 = vmatpush1.bf16.msra.mxu0 %v822_v19 }
  0x6b   :  { %767 = vmatprep.subr.bf16.mxu0 %v1030_v0 }
  0x6c   :  { %752 = vmatpush3.bf16.msra.mxu1 %v829_v23 }
  0x6d   :  { %694 = vmatmul.mubr.msk.bf16.vlgmr.msra.gmra.mxu0 %vm175_vm1, %v811_v9  ;;  %753 = vmatprep.subr.bf16.mxu1 %v1030_v0 }
  0x6e   :  { %768 = vmatpush3.bf16.msra.mxu0 %v826_v20  ;;  %783 = vmatprep.mubr.msk.bf16.mxu0 %vm1031_vm0, %v1030_v0 }
  0x6f   :  { %769 = vmatprep.subr.bf16.mxu0 %v1030_v0 }
  0x70   :  { %754 = vmatpush3.bf16.msra.mxu1 %v831_v25  ;;  %v674_v25 = vld [vmem:[%s1185_s3] ss:$0 sm:$0xff]  ;;  %s989_s3 = scalar_lea.vmem %s660_s18, 256 }
  0x71   :  { %755 = vmatprep.subr.bf16.mxu1 %v1030_v0  ;;  %p990_p7 = scmp.ne.s32.totalorder %s660_s18, %s989_s3  ;;  %p995_p9 = scmp.lt.s32.totalorder %s989_s3, %s989_s3 }
  0x72   :  { %770 = vmatpush3.bf16.msra.mxu0 %v828_v22 }
  0x73   :  { %771 = vmatprep.subr.bf16.mxu0 %v1030_v0  ;;  %p996_p10 = por %p995_p9, %p994_p8 }
  0x74   :  { %756 = vmatpush3.bf16.msra.mxu1 %v833_v27 }
  0x75   :  { %757 = vmatprep.subr.bf16.mxu1 %v1030_v0  ;;  %p997_p11 = pnand %p996_p10, %p990_p7 }
  0x76   :  { %772 = vmatpush3.bf16.msra.mxu0 %v830_v24 }
  0x77   :  { %773 = vmatprep.subr.bf16.mxu0 %v1030_v0 }
  0x78   :  { %758 = vmatpush3.bf16.msra.mxu1 %v835_v29 }
  0x79   :  { %759 = vmatprep.subr.bf16.mxu1 %v1030_v0 }
  0x7a   :  { %774 = vmatpush3.bf16.msra.mxu0 %v832_v26  ;;  %v704_v26 = vld [vmem:[%s1192_s10] ss:$0 sm:$0xff] }
  0x7b   :  { %775 = vmatprep.subr.bf16.mxu0 %v1030_v0 }
  0x7c   :  { %760 = vmatpush3.bf16.msra.mxu1 %v837_v31 }
  0x7d   :  { %761 = vmatprep.subr.bf16.mxu1 %v1030_v0 }
  0x7e   :  { %776 = vmatpush3.bf16.msra.mxu0 %v834_v28 }
  0x7f   :  { %777 = vmatprep.subr.bf16.mxu0 %v1030_v0 }
  0x80   :  { %762 = vmatpush3.bf16.msra.mxu1 %v839_v33 }
  0x82   :  { %778 = vmatpush3.bf16.msra.mxu0 %v836_v30 }
  0x83   :  { %779 = vmatprep.subr.bf16.mxu0 %v1030_v0 }
  0x86   :  { %780 = vmatpush3.bf16.msra.mxu0 %v838_v32 }
  0x87   :  { %781 = vmatprep.subr.bf16.mxu0 %v1030_v0 }
  0x8a   :  { %782 = vmatpush3.bf16.msra.mxu0 %v840_v34 }
 0x121   :  { %v213_v36 = vpop.f32.mrf.mxu0 }
 0x122   :  { %v214_v27 = vadd.f32 %v674_v25, %v213_v36 }
 0x123   :  { %v745_v37 = vpop.f32.mrf.mxu0  ;;  %v304_v41 = vpop.f32.mrf.mxu1 }
 0x125   :  { %v216_v39 = vpop.f32.mrf.mxu0  ;;  %v306_v45 = vpop.f32.mrf.mxu1 }
 0x126   :  { %v217_v31 = vadd.f32 %v674_v25, %v216_v39 }
 0x127   :  { %v746_v40 = vpop.f32.mrf.mxu0  ;;  %v308_v50 = vpop.f32.mrf.mxu1 }
 0x129   :  { %v310_v57 = vpop.f32.mrf.mxu1 }
 0x12d   :  { %v377_v47 = vpop.f32.mrf.mxu0 }
 0x12e   :  { %v378_v48 = vadd.f32 %v377_v47, %v304_v41 }
 0x12f   :  { %v379_v51 = vpop.f32.mrf.mxu0 }
 0x130   :  { %v398_v52 = vadd.f32 %v391_v46, %v378_v48  ;;  %v380_v53 = vadd.f32 %v379_v51, %v306_v45 }
 0x131   :  { %v381_v54 = vpop.f32.mrf.mxu0 }
 0x132   :  { %v399_v55 = vadd.f32 %v395_v49, %v380_v53  ;;  %v382_v56 = vadd.f32 %v381_v54, %v308_v50  ;;  %v402_v59 = vmul.f32 0.2, %v398_v52 }
 0x133   :  { %v383_v58 = vpop.f32.mrf.mxu0 }
 0x134   :  { %v400_v60 = vadd.f32 %v391_v46, %v382_v56  ;;  %v384_v61 = vadd.f32 %v383_v58, %v310_v57  ;;  %v403_v62 = vmul.f32 0.2, %v399_v55  ;;  %v406_v1 = vmax.f32 %v398_v52, %v402_v59 }
 0x136   :  { %v404_v63 = vmul.f32 0.2, %v400_v60  ;;  %v401_v0 = vadd.f32 %v395_v49, %v384_v61  ;;  %v407_v4 = vmax.f32 %v399_v55, %v403_v62 }
 0x138   :  { %v408_v2 = vmax.f32 %v400_v60, %v404_v63  ;;  %v405_v3 = vmul.f32 0.2, %v401_v0 }
 0x13a   :  { %v410_v5 = vpack.c.bf16 %v408_v2, %v406_v1  ;;  %v409_v6 = vmax.f32 %v401_v0, %v405_v3 }
 0x13c   :  { %v411_v7 = vpack.c.bf16 %v409_v6, %v407_v4  ;;  %764 = vmatmul.mubr.bf16.vlgmr.msra.gmra.mxu1 %v410_v5 }
 0x13e   :  { %784 = vmatmul.mubr.bf16.vlgmr.msra.gmra.mxu0 %v411_v7 }
 0x1fc   :  { %v517_v9 = vpop.f32.mrf.mxu1 }
 0x1fd   :  { %v518_v10 = vadd.f32 %v695_v8, %v517_v9 }
 0x1fe   :  { %v765_v11 = vpop.f32.mrf.mxu1  ;;  %v629_v12 = vpop.f32.mrf.mxu0 }
 0x1ff   :  { %v713_v13 = vmul.f32 -1.442695, %v518_v10  ;;  %v630_v29 = vadd.f32 %v704_v26, %v629_v12 }
 0x200   :  { %v520_v14 = vpop.f32.mrf.mxu1  ;;  %v785_v15 = vpop.f32.mrf.mxu0 }
 0x201   :  { %841 = vpow2.f32 %v713_v13  ;;  %v521_v16 = vadd.f32 %v695_v8, %v520_v14 }
 0x202   :  { %v766_v17 = vpop.f32.mrf.mxu1  ;;  %v632_v18 = vpop.f32.mrf.mxu0 }
 0x203   :  { %v714_v19 = vmul.f32 -1.442695, %v521_v16  ;;  %v633_v34 = vadd.f32 %v704_v26, %v632_v18 }
 0x204   :  { %v786_v20 = vpop.f32.mrf.mxu0 }
 0x205   :  { %843 = vpow2.f32 %v714_v19 }
 0x20e   :  { %v842_v21 = vpop.eup %841 }
 0x20f   :  { %v642_v22 = vadd.f32 1.0, %v842_v21 }
 0x211   :  { %845 = vrcp.f32 %v642_v22 }
 0x212   :  { %v844_v23 = vpop.eup %843 }
 0x213   :  { %v643_v24 = vadd.f32 1.0, %v844_v23 }
 0x215   :  { %847 = vrcp.f32 %v643_v24 }
 0x21e   :  { %v846_v28 = vpop.eup %845 }
 0x21f   :  { %v648_v30 = vmul.f32 %v846_v28, %v214_v27 }
 0x221   :  { %v650_v32 = vadd.f32 %v648_v30, %v630_v29 }
 0x222   :  { %v848_v33 = vpop.eup %847 }
 0x223   :  { %652 = vst [vmem:[#allocation14] sm:$0xff] %v650_v32  ;;  %v649_v35 = vmul.f32 %v848_v33, %v217_v31 }
 0x225   :  { %v651_v37 = vadd.f32 %v649_v35, %v633_v34 }
 0x227   :  { %653 = vst [vmem:[#allocation14 + $0x8] sm:$0xff] %v651_v37 }
 0x228   :  { %1000 = shalt.err (!%p997_p11)
}
 0x229   :  { %665 = dma.vmem_to_hbm [thread:$0]  %s660_s18, 256, %s1193_s11, [#allocation4], %s1023_s27, %s1023_s27, %s1024_s28  }
 0x22a   :  { %1017 = dma.done.wait [#allocation4], 256  }
 0x22b   :  { %1018 = vsyncadd [#allocation4], 4294967040 }
 0x22c   :  { %669 = vsyncpa [#allocation3], 1 }
 0x22d   :  { %670 = vsyncpa [#allocation6], 1 }
 0x22e   :  { %671 = vsyncpa [#allocation9], 1 }
 0x22f   :  { %672 = vsyncpa [#allocation12], 1 }
 0x230   :  { %673 = vsyncpa [#allocation4], 1 }

</bundles_post_ra>
